<compile_context>
chip_gen: v5e
topology: v5e:2x2
jax: 0.10.0
libtpu: 0.0.40
codegen_flags: <defaults>
</compile_context>

<pallas_src>
import jax
import jax.numpy as jnp
from jax.experimental import pallas as pl
from jax.experimental.pallas import tpu as pltpu


# ----------------------------------------------------------------------------
# Parameter packing (do this ONCE; hoist out of any time-step loop).
# ----------------------------------------------------------------------------
def pack_lstm_params(w, u, b, compute_dtype=jnp.bfloat16):
    """Pack per-gate parameters for the kernels.

    w: (4, H, I), u: (4, H, H), b: (4, M, H), gate order (i, f, o, g).
    Returns:
      w_packed: (I, 4H)   in `compute_dtype`   (input-weight contraction)
      u_packed: (H, 4H)   in `compute_dtype`   (recurrent contraction)
      b_packed: (M, 4H)   float32              (per-map-unit bias)
    """
    w_packed = jnp.concatenate([w[k].T for k in range(4)], axis=1).astype(
        compute_dtype)                                              # (I, 4H)
    u_packed = jnp.concatenate([u[k].T for k in range(4)], axis=1).astype(
        compute_dtype)                                              # (H, 4H)
    b_packed = jnp.concatenate([b[k] for k in range(4)], axis=1).astype(
        jnp.float32)                                                # (M, 4H)
    # TODO(synk): for v5e, pad I / H / 4H up to multiples of 128 (256 on
    # v6e/v7x) here so the MXU never runs masked passes; x/h operands and the
    # gate slices would then need matching zero padding.
    return w_packed, u_packed, b_packed


# ----------------------------------------------------------------------------
# Small helpers
# ----------------------------------------------------------------------------
def _sigmoid(z):
    # One EUP transcendental (tanh) instead of exp + divide: halves EUP
    # pressure in the gate epilogue (the saturating VLIW slot for small I+H,
    # especially on v5e which has no bf16 EUP).
    return 0.5 * (jnp.tanh(0.5 * z) + 1.0)


def _tpu_vmem_budget():
    """(vmem_limit_bytes, target_rows) tuned per TPU generation.

    v5e/v6e (and v4/v5p) have 128 MiB physical VMEM -> bigger row blocks and a
    96 MiB scoped limit; v7x has 64 MiB per TensorCore -> ~48 MiB and smaller
    row blocks (its 2.2x HBM bandwidth hides the extra grid steps).
    """
    try:
        cap = int(pltpu.get_tpu_info().vmem_capacity_bytes)
    except Exception:  # unknown chip / no query support: conservative default
        return 32 * 1024 * 1024, 512
    if cap >= 96 * 1024 * 1024:
        return 96 * 1024 * 1024, 1024
    return min(48 * 1024 * 1024, (cap * 3) // 4), 512


def _choose_block_batches(batch, map_units, target_rows):
    """Pick batches-per-block so block_n = d * map_units is sublane friendly.

    Preference: largest divisor d of `batch` with block_n % 16 == 0 (bf16
    sublane pairs) and block_n <= target_rows; then % 8 == 0; else the full
    batch (a block equal to the full array is always layout-legal).
    """
    if batch * map_units <= target_rows:
        return batch
    divisors = [d for d in range(1, batch + 1) if batch % d == 0]
    for align in (16, 8):
        cands = [d for d in divisors
                 if (d * map_units) % align == 0
                 and d * map_units <= target_rows]
        if cands:
            return max(cands)
    # TODO(synk): pad N up to a legal block multiple instead of falling back
    # to a single full-batch block for awkward (B, M) combinations.
    return batch


def _resident_spec(block_shape, index_map):
    """Grid-resident operand (constant index_map): single-buffer it when the
    installed Pallas supports per-operand pipeline_mode (no need for double
    buffers -> halves the VMEM footprint of the packed weights/bias)."""
    try:
        return pl.BlockSpec(block_shape, index_map,
                            pipeline_mode=pl.Buffered(1))
    except (TypeError, AttributeError):
        return pl.BlockSpec(block_shape, index_map)


# ----------------------------------------------------------------------------
# Single-step kernel (matches the PyTorch module's forward)
# ----------------------------------------------------------------------------
def _lstm_cell_kernel(x_ref, h_ref, c_ref, w_ref, u_ref, b_ref,
                      h_out_ref, c_out_ref):
    """One row-block (block_n rows = whole batches) of the LSTM cell.

    x_ref : (block_n, I)        input rows (cast in-VMEM for the MXU)
    h_ref : (block_n, H)        previous hidden state
    c_ref : (block_n, H)        previous cell state
    w_ref : (I, 4H)             packed input weights   (grid-resident)
    u_ref : (H, 4H)             packed recurrent wts   (grid-resident)
    b_ref : (block_n, 4H) f32   pre-broadcast bias     (grid-resident)
    h_out_ref, c_out_ref : (block_n, H) separate outputs (full-width stores,
                           independent dtypes for h and c).
    """
    hidden = c_ref.shape[-1]

    # Two MXU pushes into one f32 accumulator: same MXU cost as a fused
    # [x | h] matmul, but with no wrapper-side HBM concat / cast pass.
    gates = jnp.dot(x_ref[...].astype(w_ref.dtype), w_ref[...],
                    preferred_element_type=jnp.float32)
    gates = gates + jnp.dot(h_ref[...].astype(u_ref.dtype), u_ref[...],
                            preferred_element_type=jnp.float32)
    # Resident pre-broadcast bias: plain VPU add, no jnp.tile temp.
    gates = gates + b_ref[...]

    # NOTE: for production H that is a multiple of 128 these are vreg-aligned
    # lane slices; for tiny H they cost a few lane selects.
    i = _sigmoid(gates[:, 0 * hidden:1 * hidden])
    f = _sigmoid(gates[:, 1 * hidden:2 * hidden])
    o = _sigmoid(gates[:, 2 * hidden:3 * hidden])
    g = jnp.tanh(gates[:, 3 * hidden:4 * hidden])

    c_new = f * c_ref[...].astype(jnp.float32) + i * g
    h_new = o * jnp.tanh(c_new)

    h_out_ref[...] = h_new.astype(h_out_ref.dtype)
    c_out_ref[...] = c_new.astype(c_out_ref.dtype)


@jax.jit
def lstm_cell_forward(x, state, w_packed, u_packed, b_packed):
    """Single LSTM-cell step (mirrors the PyTorch module's forward).

    x        : (B, M, I) or (M, I)
    state    : None, or (h, c) each (B, M, H) / (M, H)
    w_packed : (I, 4H), u_packed: (H, 4H), b_packed: (M, 4H) f32
               from pack_lstm_params (hoisted, reused every step).
    returns (h_t, c_t) shaped like the state.
    """
    is_batched = x.ndim == 3
    if not is_batched:
        x = x[None]
        if state is not None:
            state = (state[0][None], state[1][None])
    B, M, I = x.shape
    H = u_packed.shape[0]
    four_h = u_packed.shape[1]
    if state is None:
        h = jnp.zeros((B, M, H), x.dtype)
        c = jnp.zeros((B, M, H), x.dtype)
    else:
        h, c = state
    N = B * M

    vmem_limit, target_rows = _tpu_vmem_budget()
    block_b = _choose_block_batches(B, M, target_rows)
    block_n = block_b * M

    x2 = x.reshape(N, I)
    h2 = h.reshape(N, H)
    c2 = c.reshape(N, H)
    # Pre-broadcast bias for one row block (blocks cover whole batches, so the
    # same (block_n, 4H) slab is valid — and resident — for every grid step).
    b_blk = jnp.tile(b_packed, (block_b, 1))

    def row_spec(cols):
        return pl.BlockSpec((block_n, cols), lambda r: (r, 0))

    h_new, c_new = pl.pallas_call(
        _lstm_cell_kernel,
        out_shape=(jax.ShapeDtypeStruct((N, H), h.dtype),
                   jax.ShapeDtypeStruct((N, H), c.dtype)),
        grid_spec=pltpu.PrefetchScalarGridSpec(
            num_scalar_prefetch=0,
            grid=(N // block_n,),
            in_specs=[
                row_spec(I),                                        # x
                row_spec(H),                                        # h_{t-1}
                row_spec(H),                                        # c_{t-1}
                _resident_spec((I, four_h), lambda r: (0, 0)),      # W pack
                _resident_spec((H, four_h), lambda r: (0, 0)),      # U pack
                _resident_spec((block_n, four_h), lambda r: (0, 0)),  # bias
            ],
            out_specs=[row_spec(H), row_spec(H)],
        ),
        compiler_params=pltpu.CompilerParams(
            dimension_semantics=("parallel",),
            vmem_limit_bytes=vmem_limit,
        ),
    )(x2, h2, c2, w_packed, u_packed, b_blk)
    # TODO(synk): when driving this per-step API from a scan, donate h/c and
    # add input_output_aliases; better, use lstm_sequence_forward below.

    h_new = h_new.reshape(B, M, H)
    c_new = c_new.reshape(B, M, H)
    if not is_batched:
        h_new, c_new = h_new[0], c_new[0]
    return h_new, c_new


# ----------------------------------------------------------------------------
# Weight-stationary sequence kernel (whole time loop inside one pallas_call)
# ----------------------------------------------------------------------------
def _lstm_seq_kernel(x_ref, h0_ref, c0_ref, w_ref, u_ref, b_ref,
                     h_seq_ref, h_last_ref, c_last_ref, h_sc, c_sc):
    """Grid = (row_blocks, T); packed weights/bias stay VMEM-resident for the
    whole sequence, the running (h, c) state lives in f32 VMEM scratch."""
    t = pl.program_id(1)
    hidden = c_sc.shape[-1]

    @pl.when(t == 0)
    def _init():
        h_sc[...] = h0_ref[...].astype(jnp.float32)
        c_sc[...] = c0_ref[...].astype(jnp.float32)

    gates = jnp.dot(x_ref[...].astype(w_ref.dtype), w_ref[...],
                    preferred_element_type=jnp.float32)
    gates = gates + jnp.dot(h_sc[...].astype(u_ref.dtype), u_ref[...],
                            preferred_element_type=jnp.float32)
    gates = gates + b_ref[...]

    i = _sigmoid(gates[:, 0 * hidden:1 * hidden])
    f = _sigmoid(gates[:, 1 * hidden:2 * hidden])
    o = _sigmoid(gates[:, 2 * hidden:3 * hidden])
    g = jnp.tanh(gates[:, 3 * hidden:4 * hidden])

    c_new = f * c_sc[...] + i * g
    h_new = o * jnp.tanh(c_new)
    c_sc[...] = c_new
    h_sc[...] = h_new

    # Per-step hidden state out (callers that only need the final state could
    # drop this output; it could also be emitted in bf16 to halve writeback).
    h_seq_ref[...] = h_new.astype(h_seq_ref.dtype)

    @pl.when(t == pl.num_programs(1) - 1)
    def _finalize():
        h_last_ref[...] = h_sc[...].astype(h_last_ref.dtype)
        c_last_ref[...] = c_sc[...].astype(c_last_ref.dtype)


@jax.jit
def lstm_sequence_forward(x_seq, state, w_packed, u_packed, b_packed):
    """Run the LSTM cell over a whole sequence in ONE pallas_call.

    x_seq : (T, B, M, I)
    state : None, or (h0, c0) each (B, M, H)
    returns (h_seq (T, B, M, H), h_T (B, M, H), c_T (B, M, H)).
    """
    T, B, M, I = x_seq.shape
    H = u_packed.shape[0]
    four_h = u_packed.shape[1]
    if state is None:
        h0 = jnp.zeros((B, M, H), x_seq.dtype)
        c0 = jnp.zeros((B, M, H), x_seq.dtype)
    else:
        h0, c0 = state
    N = B * M

    vmem_limit, target_rows = _tpu_vmem_budget()
    block_b = _choose_block_batches(B, M, target_rows)
    block_n = block_b * M

    x2 = x_seq.reshape(T, N, I)
    h2 = h0.reshape(N, H)
    c2 = c0.reshape(N, H)
    b_blk = jnp.tile(b_packed, (block_b, 1))

    h_seq, h_last, c_last = pl.pallas_call(
        _lstm_seq_kernel,
        out_shape=(jax.ShapeDtypeStruct((T, N, H), h0.dtype),
                   jax.ShapeDtypeStruct((N, H), h0.dtype),
                   jax.ShapeDtypeStruct((N, H), c0.dtype)),
        grid_spec=pltpu.PrefetchScalarGridSpec(
            num_scalar_prefetch=0,
            grid=(N // block_n, T),     # rows outer (parallel), time inner
            in_specs=[
                pl.BlockSpec((None, block_n, I), lambda r, t: (t, r, 0)),  # x_t
                pl.BlockSpec((block_n, H), lambda r, t: (r, 0)),           # h0
                pl.BlockSpec((block_n, H), lambda r, t: (r, 0)),           # c0
                _resident_spec((I, four_h), lambda r, t: (0, 0)),          # W
                _resident_spec((H, four_h), lambda r, t: (0, 0)),          # U
                _resident_spec((block_n, four_h), lambda r, t: (0, 0)),    # b
            ],
            out_specs=[
                pl.BlockSpec((None, block_n, H), lambda r, t: (t, r, 0)),  # h_t
                pl.BlockSpec((block_n, H), lambda r, t: (r, 0)),           # h_T
                pl.BlockSpec((block_n, H), lambda r, t: (r, 0)),           # c_T
            ],
            scratch_shapes=[pltpu.VMEM((block_n, H), jnp.float32),
                            pltpu.VMEM((block_n, H), jnp.float32)],
        ),
        compiler_params=pltpu.CompilerParams(
            dimension_semantics=("parallel", "arbitrary"),
            vmem_limit_bytes=vmem_limit,
        ),
        # In-place state update: h0 -> h_T, c0 -> c_T.
        input_output_aliases={1: 1, 2: 2},
    )(x2, h2, c2, w_packed, u_packed, b_blk)

    return (h_seq.reshape(T, B, M, H),
            h_last.reshape(B, M, H),
            c_last.reshape(B, M, H))


# ----------------------------------------------------------------------------
# Pure-JAX references (mirror the PyTorch module exactly, f32)
# ----------------------------------------------------------------------------
def _reference_forward(x, state, w, u, b):
    h, c = state
    pre = [jnp.einsum("hi,bmi->bmh", w[k], x)
           + jnp.einsum("hj,bmj->bmh", u[k], h)
           + b[k][None, :, :] for k in range(4)]
    i = jax.nn.sigmoid(pre[0])
    f = jax.nn.sigmoid(pre[1])
    o = jax.nn.sigmoid(pre[2])
    g = jnp.tanh(pre[3])
    c_new = f * c + i * g
    h_new = o * jnp.tanh(c_new)
    return h_new, c_new


def _reference_sequence(x_seq, state, w, u, b):
    def step(carry, x_t):
        new = _reference_forward(x_t, carry, w, u, b)
        return new, new[0]
    (h_t, c_t), h_seq = jax.lax.scan(step, state, x_seq)
    return h_seq, h_t, c_t


if __name__ == "__main__":
    # Small shapes consistent with the module's forward.
    B, M, I, H, T = 2, 8, 16, 32, 6   # batch, map_units, input, hidden, steps
    dtype = jnp.float32

    key = jax.random.PRNGKey(0)
    kx, kh, kc, kw, ku, kb, ks = jax.random.split(key, 7)

    x = jax.random.normal(kx, (B, M, I), dtype)
    h0 = jax.random.normal(kh, (B, M, H), dtype)
    c0 = jax.random.normal(kc, (B, M, H), dtype)
    x_seq = jax.random.normal(ks, (T, B, M, I), dtype)

    # Synthetic parameters (gate order i, f, o, g).
    w = 0.1 * jax.random.normal(kw, (4, H, I), dtype)   # input weights  (H, I)
    u = 0.1 * jax.random.normal(ku, (4, H, H), dtype)   # recurrent wts  (H, H)
    b = 0.1 * jax.random.normal(kb, (4, M, H), dtype)   # per-map bias   (M, H)

    h_exp, c_exp = _reference_forward(x, (h0, c0), w, u, b)
    hs_exp, hT_exp, cT_exp = _reference_sequence(x_seq, (h0, c0), w, u, b)

    # --- single step, exactness check: f32 matmul path ---
    w32, u32, bP = pack_lstm_params(w, u, b, compute_dtype=jnp.float32)
    h32, c32 = lstm_cell_forward(x, (h0, c0), w32, u32, bP)
    jax.block_until_ready((h32, c32))
    assert h32.shape == (B, M, H) and c32.shape == (B, M, H)
    assert jnp.allclose(h32, h_exp, atol=1e-5, rtol=1e-5)
    assert jnp.allclose(c32, c_exp, atol=1e-5, rtol=1e-5)

    # --- single step, default fast path: bf16 matmuls, f32 epilogue ---
    wbf, ubf, bP2 = pack_lstm_params(w, u, b, compute_dtype=jnp.bfloat16)
    hbf, cbf = lstm_cell_forward(x, (h0, c0), wbf, ubf, bP2)
    jax.block_until_ready((hbf, cbf))
    assert jnp.allclose(hbf, h_exp, atol=2e-2, rtol=2e-2)
    assert jnp.allclose(cbf, c_exp, atol=2e-2, rtol=2e-2)

    # --- weight-stationary sequence kernel, exactness check (f32) ---
    hs32, hT32, cT32 = lstm_sequence_forward(x_seq, (h0, c0), w32, u32, bP)
    jax.block_until_ready((hs32, hT32, cT32))
    assert hs32.shape == (T, B, M, H)
    assert jnp.allclose(hs32, hs_exp, atol=1e-4, rtol=1e-4)
    assert jnp.allclose(hT32, hT_exp, atol=1e-4, rtol=1e-4)
    assert jnp.allclose(cT32, cT_exp, atol=1e-4, rtol=1e-4)

    # --- weight-stationary sequence kernel, bf16 fast path (coverage) ---
    hsbf, hTbf, cTbf = lstm_sequence_forward(x_seq, (h0, c0), wbf, ubf, bP2)
    jax.block_until_ready((hsbf, hTbf, cTbf))
    assert hsbf.shape == (T, B, M, H)
    assert bool(jnp.isfinite(hsbf).all()) and bool(jnp.isfinite(cTbf).all())

    print("KERNEL_OK")
</pallas_src>

<mosaic_0001>
module attributes {stable_mosaic.version = 11 : i64} {
  func.func @_lstm_cell_kernel(%arg0: i32, %arg1: memref<16x16xf32, #tpu.memory_space<vmem>>, %arg2: memref<16x32xf32, #tpu.memory_space<vmem>>, %arg3: memref<16x32xf32, #tpu.memory_space<vmem>>, %arg4: memref<16x128xf32, #tpu.memory_space<vmem>>, %arg5: memref<32x128xf32, #tpu.memory_space<vmem>>, %arg6: memref<16x128xf32, #tpu.memory_space<vmem>>, %arg7: memref<16x32xf32, #tpu.memory_space<vmem>>, %arg8: memref<16x32xf32, #tpu.memory_space<vmem>>) attributes {dimension_semantics = [#tpu.dimension_semantics<parallel>], iteration_bounds = array<i64: 1>, scalar_prefetch = 0 : i64, scratch_operands = 0 : i64, tpu.core_type = #tpu.core_type<tc>, window_params = [{transform_indices = @transform_0, window_bounds = array<i64: 16, 16>}, {transform_indices = @transform_1, window_bounds = array<i64: 16, 32>}, {transform_indices = @transform_2, window_bounds = array<i64: 16, 32>}, {pipeline_mode = #tpu.pipeline_mode<synchronous>, transform_indices = @transform_3, window_bounds = array<i64: 16, 128>}, {pipeline_mode = #tpu.pipeline_mode<synchronous>, transform_indices = @transform_4, window_bounds = array<i64: 32, 128>}, {pipeline_mode = #tpu.pipeline_mode<synchronous>, transform_indices = @transform_5, window_bounds = array<i64: 16, 128>}, {transform_indices = @transform_6, window_bounds = array<i64: 16, 32>}, {transform_indices = @transform_7, window_bounds = array<i64: 16, 32>}]} {
    %c0 = arith.constant 0 : index
    %c0_0 = arith.constant 0 : index
    %0 = vector.load %arg1[%c0, %c0_0] : memref<16x16xf32, #tpu.memory_space<vmem>>, vector<16x16xf32>
    %c0_1 = arith.constant 0 : index
    %c0_2 = arith.constant 0 : index
    %1 = vector.load %arg4[%c0_1, %c0_2] : memref<16x128xf32, #tpu.memory_space<vmem>>, vector<16x128xf32>
    %cst = arith.constant dense<0.000000e+00> : vector<16x128xf32>
    %2 = tpu.matmul %0, %1, %cst {dimension_numbers = #tpu.dot_dimension_numbers<[1], [0], [0], [1], [0, 0, 1, 1], [], []>} : vector<16x16xf32>, vector<16x128xf32>, vector<16x128xf32> -> vector<16x128xf32>
    %c0_3 = arith.constant 0 : index
    %c0_4 = arith.constant 0 : index
    %3 = vector.load %arg2[%c0_3, %c0_4] : memref<16x32xf32, #tpu.memory_space<vmem>>, vector<16x32xf32>
    %c0_5 = arith.constant 0 : index
    %c0_6 = arith.constant 0 : index
    %4 = vector.load %arg5[%c0_5, %c0_6] : memref<32x128xf32, #tpu.memory_space<vmem>>, vector<32x128xf32>
    %cst_7 = arith.constant dense<0.000000e+00> : vector<16x128xf32>
    %5 = tpu.matmul %3, %4, %cst_7 {dimension_numbers = #tpu.dot_dimension_numbers<[1], [0], [0], [1], [0, 0, 1, 1], [], []>} : vector<16x32xf32>, vector<32x128xf32>, vector<16x128xf32> -> vector<16x128xf32>
    %6 = arith.addf %2, %5 : vector<16x128xf32>
    %c0_8 = arith.constant 0 : index
    %c0_9 = arith.constant 0 : index
    %7 = vector.load %arg6[%c0_8, %c0_9] : memref<16x128xf32, #tpu.memory_space<vmem>>, vector<16x128xf32>
    %8 = arith.addf %6, %7 : vector<16x128xf32>
    %9 = vector.extract_strided_slice %8 {offsets = [0, 0], sizes = [16, 32], strides = [1, 1]} : vector<16x128xf32> to vector<16x32xf32>
    %cst_10 = arith.constant 5.000000e-01 : f32
    %10 = vector.broadcast %cst_10 : f32 to vector<16x32xf32>
    %11 = arith.mulf %10, %9 : vector<16x32xf32>
    %12 = math.tanh %11 : vector<16x32xf32>
    %cst_11 = arith.constant 1.000000e+00 : f32
    %13 = vector.broadcast %cst_11 : f32 to vector<16x32xf32>
    %14 = arith.addf %12, %13 : vector<16x32xf32>
    %cst_12 = arith.constant 5.000000e-01 : f32
    %15 = vector.broadcast %cst_12 : f32 to vector<16x32xf32>
    %16 = arith.mulf %15, %14 : vector<16x32xf32>
    %17 = vector.extract_strided_slice %8 {offsets = [0, 32], sizes = [16, 32], strides = [1, 1]} : vector<16x128xf32> to vector<16x32xf32>
    %cst_13 = arith.constant 5.000000e-01 : f32
    %18 = vector.broadcast %cst_13 : f32 to vector<16x32xf32>
    %19 = arith.mulf %18, %17 : vector<16x32xf32>
    %20 = math.tanh %19 : vector<16x32xf32>
    %cst_14 = arith.constant 1.000000e+00 : f32
    %21 = vector.broadcast %cst_14 : f32 to vector<16x32xf32>
    %22 = arith.addf %20, %21 : vector<16x32xf32>
    %cst_15 = arith.constant 5.000000e-01 : f32
    %23 = vector.broadcast %cst_15 : f32 to vector<16x32xf32>
    %24 = arith.mulf %23, %22 : vector<16x32xf32>
    %25 = vector.extract_strided_slice %8 {offsets = [0, 64], sizes = [16, 32], strides = [1, 1]} : vector<16x128xf32> to vector<16x32xf32>
    %cst_16 = arith.constant 5.000000e-01 : f32
    %26 = vector.broadcast %cst_16 : f32 to vector<16x32xf32>
    %27 = arith.mulf %26, %25 : vector<16x32xf32>
    %28 = math.tanh %27 : vector<16x32xf32>
    %cst_17 = arith.constant 1.000000e+00 : f32
    %29 = vector.broadcast %cst_17 : f32 to vector<16x32xf32>
    %30 = arith.addf %28, %29 : vector<16x32xf32>
    %cst_18 = arith.constant 5.000000e-01 : f32
    %31 = vector.broadcast %cst_18 : f32 to vector<16x32xf32>
    %32 = arith.mulf %31, %30 : vector<16x32xf32>
    %33 = vector.extract_strided_slice %8 {offsets = [0, 96], sizes = [16, 32], strides = [1, 1]} : vector<16x128xf32> to vector<16x32xf32>
    %34 = math.tanh %33 : vector<16x32xf32>
    %c0_19 = arith.constant 0 : index
    %c0_20 = arith.constant 0 : index
    %35 = vector.load %arg3[%c0_19, %c0_20] : memref<16x32xf32, #tpu.memory_space<vmem>>, vector<16x32xf32>
    %36 = arith.mulf %24, %35 : vector<16x32xf32>
    %37 = arith.mulf %16, %34 : vector<16x32xf32>
    %38 = arith.addf %36, %37 : vector<16x32xf32>
    %39 = math.tanh %38 : vector<16x32xf32>
    %40 = arith.mulf %32, %39 : vector<16x32xf32>
    %c0_21 = arith.constant 0 : index
    %c0_22 = arith.constant 0 : index
    %41 = vector.load %arg7[%c0_21, %c0_22] : memref<16x32xf32, #tpu.memory_space<vmem>>, vector<16x32xf32>
    tpu.vector_store %arg7[%c0_21, %c0_22], %40 {strides = array<i32>} : memref<16x32xf32, #tpu.memory_space<vmem>>, vector<16x32xf32>,
    %c0_23 = arith.constant 0 : index
    %c0_24 = arith.constant 0 : index
    %42 = vector.load %arg8[%c0_23, %c0_24] : memref<16x32xf32, #tpu.memory_space<vmem>>, vector<16x32xf32>
    tpu.vector_store %arg8[%c0_23, %c0_24], %38 {strides = array<i32>} : memref<16x32xf32, #tpu.memory_space<vmem>>, vector<16x32xf32>,
    return
  }
  func.func @transform_0(%arg0: i32) -> (i32, i32) {
    %c0_i32 = arith.constant 0 : i32
    %c0_i32_0 = arith.constant 0 : i32
    return %arg0, %c0_i32 : i32, i32
  }
  func.func @transform_1(%arg0: i32) -> (i32, i32) {
    %c0_i32 = arith.constant 0 : i32
    %c0_i32_0 = arith.constant 0 : i32
    return %arg0, %c0_i32 : i32, i32
  }
  func.func @transform_2(%arg0: i32) -> (i32, i32) {
    %c0_i32 = arith.constant 0 : i32
    %c0_i32_0 = arith.constant 0 : i32
    return %arg0, %c0_i32 : i32, i32
  }
  func.func @transform_3(%arg0: i32) -> (i32, i32) {
    %c0_i32 = arith.constant 0 : i32
    %c0_i32_0 = arith.constant 0 : i32
    %c0_i32_1 = arith.constant 0 : i32
    return %c0_i32, %c0_i32_0 : i32, i32
  }
  func.func @transform_4(%arg0: i32) -> (i32, i32) {
    %c0_i32 = arith.constant 0 : i32
    %c0_i32_0 = arith.constant 0 : i32
    %c0_i32_1 = arith.constant 0 : i32
    return %c0_i32, %c0_i32_0 : i32, i32
  }
  func.func @transform_5(%arg0: i32) -> (i32, i32) {
    %c0_i32 = arith.constant 0 : i32
    %c0_i32_0 = arith.constant 0 : i32
    %c0_i32_1 = arith.constant 0 : i32
    return %c0_i32, %c0_i32_0 : i32, i32
  }
  func.func @transform_6(%arg0: i32) -> (i32, i32) {
    %c0_i32 = arith.constant 0 : i32
    %c0_i32_0 = arith.constant 0 : i32
    return %arg0, %c0_i32 : i32, i32
  }
  func.func @transform_7(%arg0: i32) -> (i32, i32) {
    %c0_i32 = arith.constant 0 : i32
    %c0_i32_0 = arith.constant 0 : i32
    return %arg0, %c0_i32 : i32, i32
  }
}

</mosaic_0001>

<bundles_post_ra>
// kernel: lstm_cell_forward.1
= control target key start
LH: loop header
LB: loop body
LE: loop exit
PB: predicated region body
PF: predicated region fallthrough
CT: control target
= control target key end

     0   :  { %13 = vsyncpa [#allocation3], 0  ;;  %s577_s0 = inlined_call_operand.vmem [shape: f32[16,16], index: 0, kind: input, shape index: {}]   ;;  %s578_s1 = inlined_call_operand.hbm [shape: f32[16,32], index: 1, kind: input, shape index: {}]   ;;  %s579_s2 = inlined_call_operand.hbm [shape: f32[16,32], index: 2, kind: input, shape index: {}]   ;;  %s580_s3 = inlined_call_operand.hbm [shape: f32[16,128], index: 3, kind: input, shape index: {}]   ;;  %s581_s4 = inlined_call_operand.hbm [shape: f32[32,128], index: 4, kind: input, shape index: {}]   ;;  %s582_s5 = inlined_call_operand.vmem [shape: f32[16,128], index: 5, kind: input, shape index: {}]   ;;  %s583_s6 = inlined_call_operand.hbm [shape: f32[16,32], index: 6, kind: output, shape index: {0}]   ;;  %s584_s7 = inlined_call_operand.hbm [shape: f32[16,32], index: 7, kind: output, shape index: {1}]  }
   0x1   :  { %14 = vsyncpa [#allocation6], 0 }
   0x2   :  { %15 = vsyncpa [#allocation9], 0 }
   0x3   :  { %16 = vsyncpa [#allocation4], 0 }
   0x4   :  { %17 = vsyncpa [#allocation12], 0  ;;  %s37_s26 = sshll.u32 %s579_s2, 4  ;;  %s464_s27 = smov [#allocation5]   ;;  %s38_s26 = int_to_ptr.hbm [resolvable:$true] %s37_s26 }
   0x5   :  { %s39_s28 = sshll.u32 %s464_s27, 4  ;;  %s24_s8 = sshll.u32 %s578_s1, 4  ;;  %s40_s28 = int_to_ptr.vmem [resolvable:$true] %s39_s28  ;;  %s25_s8 = int_to_ptr.hbm [resolvable:$true] %s24_s8 }
   0x6   :  { %s465_s9 = smov 128   ;;  %s466_s10 = smov 8  }
   0x7   :  { %45 = dma.hbm_to_vmem [thread:$0]  %s38_s26, 256, %s40_s28, [#allocation6], %s465_s9, %s465_s9, %s466_s10  }
   0x8   :  { %s467_s11 = smov [#allocation2]   ;;  %s50_s2 = sshll.u32 %s580_s3, 4  ;;  %s51_s2 = int_to_ptr.hbm [resolvable:$true] %s50_s2 }
   0x9   :  { %s26_s12 = sshll.u32 %s467_s11, 4  ;;  %s63_s16 = sshll.u32 %s581_s4, 4  ;;  %s27_s12 = int_to_ptr.vmem [resolvable:$true] %s26_s12  ;;  %s64_s16 = int_to_ptr.hbm [resolvable:$true] %s63_s16 }
   0xa   :  { %32 = dma.hbm_to_vmem [thread:$0]  %s25_s8, 256, %s27_s12, [#allocation3], %s465_s9, %s465_s9, %s466_s10  }
   0xb   :  { %s468_s17 = smov [#allocation7]   ;;  %s469_s19 = smov [#allocation8]  }
   0xc   :  { %s52_s18 = sshll.u32 %s468_s17, 4  ;;  %s65_s3 = sshll.u32 %s469_s19, 4  ;;  %s53_s18 = int_to_ptr.vmem [resolvable:$true] %s52_s18  ;;  %s66_s3 = int_to_ptr.vmem [resolvable:$true] %s65_s3 }
   0xd   :  { %58 = dma.hbm_to_vmem [thread:$0]  %s51_s2, 256, %s53_s18, [#allocation6], %s465_s9, %s465_s9, %s466_s10  }
   0xe   :  { %71 = dma.hbm_to_vmem [thread:$0]  %s64_s16, 512, %s66_s3, [#allocation9], %s465_s9, %s465_s9, %s466_s10  }
   0xf   :  { %454 = dma.done.wait [#allocation3], 256  }
  0x10   :  { %455 = vsyncadd [#allocation3], 4294967040 }
  0x11   :  { %456 = dma.done.wait [#allocation6], 512  }
  0x12   :  { %457 = vsyncadd [#allocation6], 4294966784 }
  0x13   :  { %458 = dma.done.wait [#allocation9], 512  }
  0x14   :  { %459 = vsyncadd [#allocation9], 4294966784  ;;  %v99_v0 = vld [vmem:[#allocation8 + $0x18] sm:$0xff]  ;;  %v98_v1 = vld [vmem:[#allocation8 + $0x10] sm:$0xff]  ;;  %vm130_vm0 = vcmask 130048   ;;  %vm100_vm1 = vcmask 261120  }
  0x15   :  { %119 = vmatpush.msra.mxu0 %v99_v0  ;;  %281 = vmatpush.msra.mxu2 %v99_v0  ;;  %v93_v2 = vld [vmem:[#allocation7 + $0x8] sm:$0xff]  ;;  %v92_v3 = vld [vmem:[#allocation7] sm:$0xff]  ;;  %v97_v4 = vld [vmem:[#allocation8 + $0x8] sm:$0xff]  ;;  %s470_s23 = smov 32   ;;  %s472_s27 = smov 64  }
  0x16   :  { %151 = vmatpush.msra.mxu1 %v93_v2  ;;  %285 = vmatpush.msra.mxu3 %v93_v2  ;;  %v90_v5 = vld [vmem:[%s577_s0] sm:$0xff]  ;;  %v91_v6 = vld [vmem:[%s577_s0 + $0x8] sm:$0xff]  ;;  %v96_v7 = vld [vmem:[#allocation8] sm:$0xff]  ;;  %s473_s28 = smov [#allocation11]   ;;  %s257_s11 = sshll.u32 %s584_s7, 4  ;;  %s258_s11 = int_to_ptr.hbm [resolvable:$true] %s257_s11 }
  0x17   :  { %120 = vmatpush.msra.mxu0 %v98_v1  ;;  %282 = vmatpush.msra.mxu2 %v98_v1  ;;  %v94_v8 = vld [vmem:[#allocation2] sm:$0xff]  ;;  %v95_v9 = vld [vmem:[#allocation2 + $0x8] sm:$0xff]  ;;  %v174_v10 = vld [vmem:[#allocation5] sm:$0xff]  ;;  %s255_s29 = sshll.u32 %s473_s28, 4  ;;  %s474_s12 = smov [#allocation10]   ;;  %s256_s29 = int_to_ptr.vmem [resolvable:$true] %s255_s29 }
  0x18   :  { %152 = vmatpush.msra.mxu1 %v92_v3  ;;  %286 = vmatpush.msra.mxu3 %v92_v3  ;;  %v175_v11 = vld [vmem:[#allocation5 + $0x8] sm:$0xff]  ;;  %v160_v14 = vld [vmem:[%s582_s5] sm:$0xff]  ;;  %v161_v19 = vld [vmem:[%s582_s5 + $0x8] sm:$0xff]  ;;  %s471_s5 = smov 96   ;;  %s242_s13 = sshll.u32 %s474_s12, 4  ;;  %s243_s13 = int_to_ptr.vmem [resolvable:$true] %s242_s13 }
  0x19   :  { %121 = vmatpush.msra.mxu0 %v97_v4  ;;  %283 = vmatpush.msra.mxu2 %v97_v4  ;;  %s244_s1 = sshll.u32 %s583_s6, 4  ;;  %s245_s1 = int_to_ptr.hbm [resolvable:$true] %s244_s1 }
  0x1a   :  { %279 = vmatmul.msk.f32.vlgmr.msra.gmra.mxu1 %vm130_vm0, %v90_v5  ;;  %280 = vmatmul.msk.f32.vlgmr.msra.gmra.mxu3 %vm130_vm0, %v91_v6 }
  0x1b   :  { %122 = vmatpush.msra.mxu0 %v96_v7  ;;  %284 = vmatpush.msra.mxu2 %v96_v7 }
  0x1c   :  { %277 = vmatmul.msk.f32.vlgmr.msra.gmra.mxu0 %vm100_vm1, %v94_v8  ;;  %278 = vmatmul.msk.f32.vlgmr.msra.gmra.mxu2 %vm100_vm1, %v95_v9 }
  0x1d   :  { %178 = vrot.lane.b32.xlu1 %v174_v10, %s470_s23 }
  0x25   :  { %180 = vrot.lane.b32.xlu1 %v175_v11, %s470_s23 }
  0x8f   :  { %v179_v36 = vpop.permute.xlu1 %178 }
  0x97   :  { %v154_v12 = vpop.f32.mrf.mxu1  ;;  %v181_v40 = vpop.permute.xlu1 %180 }
  0x99   :  { %v124_v13 = vpop.f32.mrf.mxu0 }
  0x9a   :  { %v155_v15 = vadd.f32 %v154_v12, %v124_v13 }
  0x9c   :  { %v162_v16 = vadd.f32 %v160_v14, %v155_v15 }
  0x9d   :  { %v157_v17 = vpop.f32.mrf.mxu3 }
  0x9e   :  { %298 = vtanh.f32 %v162_v16  ;;  %v164_v24 = vmul.f32 0.5, %v162_v16 }
  0x9f   :  { %v127_v18 = vpop.f32.mrf.mxu2 }
  0xa0   :  { %v158_v20 = vadd.f32 %v157_v17, %v127_v18 }
  0xa2   :  { %v163_v21 = vadd.f32 %v161_v19, %v158_v20 }
  0xa4   :  { %v299_v22 = vpop.eup %298  ;;  %300 = vtanh.f32 %v163_v21  ;;  %v165_v25 = vmul.f32 0.5, %v163_v21 }
  0xa5   :  { %188 = vrot.lane.b32.xlu0 %v299_v22, %s470_s23  ;;  %302 = vtanh.f32 %v164_v24 }
  0xa6   :  { %304 = vtanh.f32 %v165_v25 }
  0xaa   :  { %v301_v23 = vpop.eup %300 }
  0xab   :  { %v303_v26 = vpop.eup %302 }
  0xac   :  { %v168_v27 = vadd.f32 1.0, %v303_v26  ;;  %v305_v29 = vpop.eup %304 }
  0xad   :  { %190 = vrot.lane.b32.xlu0 %v301_v23, %s470_s23  ;;  %v169_v32 = vadd.f32 1.0, %v305_v29 }
  0xae   :  { %v170_v28 = vmul.f32 0.5, %v168_v27 }
  0xaf   :  { %v171_v33 = vmul.f32 0.5, %v169_v32 }
  0xb0   :  { %v184_v37 = vmul.f32 %v179_v36, %v170_v28 }
  0xb1   :  { %v185_v41 = vmul.f32 %v181_v40, %v171_v33 }
 0x117   :  { %v189_v30 = vpop.permute.xlu0 %188 }
 0x118   :  { %v194_v31 = vmul.f32 %v189_v30, %v170_v28 }
 0x11a   :  { %198 = vrot.lane.b32.xlu2 %v194_v31, %s470_s23 }
 0x11f   :  { %v191_v34 = vpop.permute.xlu0 %190 }
 0x120   :  { %v195_v35 = vmul.f32 %v191_v34, %v171_v33 }
 0x122   :  { %200 = vrot.lane.b32.xlu2 %v195_v35, %s470_s23 }
 0x174   :  { %v199_v38 = vpop.permute.xlu2 %198 }
 0x175   :  { %v204_v39 = vadd.f32 %v199_v38, %v184_v37 }
 0x177   :  { %306 = vtanh.f32 %v204_v39 }
 0x17c   :  { %v201_v42 = vpop.permute.xlu2 %200 }
 0x17d   :  { %v307_v43 = vpop.eup %306  ;;  %v205_v44 = vadd.f32 %v201_v42, %v185_v41 }
 0x17e   :  { %210 = vrot.lane.b32.xlu0 %v307_v43, %s470_s23 }
 0x17f   :  { %308 = vtanh.f32 %v205_v44 }
 0x185   :  { %v309_v45 = vpop.eup %308 }
 0x186   :  { %212 = vrot.lane.b32.xlu1 %v309_v45, %s470_s23 }
 0x18e   :  { %230 = vrot.lane.b32.xlu1 %v204_v39, %s471_s5 }
 0x1f0   :  { %v211_v46 = vpop.permute.xlu0 %210 }
 0x1f1   :  { %v216_v47 = vmul.f32 %v211_v46, %v170_v28 }
 0x1f3   :  { %220 = vrot.lane.b32.xlu2 %v216_v47, %s472_s27 }
 0x1f8   :  { %v213_v48 = vpop.permute.xlu1 %212 }
 0x1f9   :  { %v217_v49 = vmul.f32 %v213_v48, %v171_v33 }
 0x1fb   :  { %222 = vrot.lane.b32.xlu0 %v217_v49, %s472_s27  ;;  %232 = vrot.lane.b32.xlu2 %v205_v44, %s471_s5 }
 0x200   :  { %v231_v50 = vpop.permute.xlu1 %230 }
 0x201   :  { %236 = vst.msk [vmem:[#allocation11] sm:$0xff] %vm100_vm1, %v231_v50 }
 0x24d   :  { %v221_v51 = vpop.permute.xlu2 %220 }
 0x24e   :  { %226 = vst.msk [vmem:[#allocation10] sm:$0xff] %vm100_vm1, %v221_v51 }
 0x255   :  { %v233_v52 = vpop.permute.xlu2 %232 }
 0x256   :  { %237 = vst.msk [vmem:[#allocation11 + $0x8] sm:$0xff] %vm100_vm1, %v233_v52 }
 0x257   :  { %263 = dma.vmem_to_hbm [thread:$0]  %s256_s29, 256, %s258_s11, [#allocation12], %s465_s9, %s465_s9, %s466_s10  }
 0x26d   :  { %v223_v53 = vpop.permute.xlu0 %222 }
 0x26e   :  { %227 = vst.msk [vmem:[#allocation10 + $0x8] sm:$0xff] %vm100_vm1, %v223_v53 }
 0x26f   :  { %250 = dma.vmem_to_hbm [thread:$0]  %s243_s13, 256, %s245_s1, [#allocation4], %s465_s9, %s465_s9, %s466_s10  }
 0x270   :  { %460 = dma.done.wait [#allocation4], 256  }
 0x271   :  { %461 = vsyncadd [#allocation4], 4294967040 }
 0x272   :  { %462 = dma.done.wait [#allocation12], 256  }
 0x273   :  { %463 = vsyncadd [#allocation12], 4294967040 }
 0x274   :  { %272 = vsyncpa [#allocation3], 1 }
 0x275   :  { %273 = vsyncpa [#allocation6], 1 }
 0x276   :  { %274 = vsyncpa [#allocation9], 1 }
 0x277   :  { %275 = vsyncpa [#allocation4], 1 }
 0x278   :  { %276 = vsyncpa [#allocation12], 1 }

</bundles_post_ra>
